<compile_context>
chip_gen: v7x
topology: tpu7x:2x2x1
jax: 0.10.0
libtpu: 0.0.40
codegen_flags: <defaults>
</compile_context>

<pallas_src>
import functools

import jax
import jax.numpy as jnp
from jax.experimental import pallas as pl
from jax.experimental.pallas import tpu as pltpu


# --------------------------------------------------------------------------
# Kernel: grid = (k_tiles,)  — hid is the (trailing, "arbitrary") reduction
# axis.  x and the output block are VMEM-resident; w1/w2/gamma/beta tiles
# stream through the Pallas double-buffered pipeline.
# --------------------------------------------------------------------------
def _mlp_kernel(x_ref, w1_ref, g_ref, beta_ref, w2_ref, b2_ref, o_ref):
    k = pl.program_id(0)

    # ---- linear1 tile: (B, IN_P)bf16 @ (IN_P, TH)bf16 -> f32 on the MXU ----
    h = jnp.dot(x_ref[...], w1_ref[...], preferred_element_type=jnp.float32)
    # (linear1 bias omitted on purpose: it cancels exactly in BatchNorm.)

    # ---- BatchNorm1d, training statistics, f32, two-pass variance ----
    inv_b = 1.0 / h.shape[0]
    mean = jnp.sum(h, axis=0, keepdims=True) * inv_b
    centered = h - mean
    var = jnp.sum(centered * centered, axis=0, keepdims=True) * inv_b

    # Fold normalize + affine into one FMA over the (B, TH) tile.
    scale = g_ref[...] * jax.lax.rsqrt(var + 1e-5)
    h = centered * scale + beta_ref[...]

    # ---- ReLU, back to bf16 for the second MXU pass ----
    h = jnp.maximum(h, 0.0).astype(jnp.bfloat16)

    # ---- linear2: accumulate directly into the resident output block ----
    @pl.when(k == 0)
    def _():
        o_ref[...] = jnp.broadcast_to(b2_ref[...], o_ref.shape)

    o_ref[...] += jnp.dot(h, w2_ref[...], preferred_element_type=jnp.float32)


# --------------------------------------------------------------------------
# Padding helpers
# --------------------------------------------------------------------------
def _round_up(x, m):
    return (x + m - 1) // m * m


def _pad2(a, rows, cols):
    pr, pc = rows - a.shape[0], cols - a.shape[1]
    if pr or pc:
        a = jnp.pad(a, ((0, pr), (0, pc)))
    return a


def _hid_tiling(hid_dim, tile_hid):
    """Pad hid UP to a multiple of the desired tile (padded features are
    inert) instead of shrinking the tile to whatever divides hid."""
    base = _round_up(hid_dim, 128)
    if base <= tile_hid:
        return base, base                      # single hid tile
    th = max(128, (tile_hid // 128) * 128)
    return th, _round_up(base, th)


# --------------------------------------------------------------------------
# One-time parameter preparation (pad + cast OUTSIDE the per-step forward)
# --------------------------------------------------------------------------
def prepare_params(w1, b1, gamma, beta, w2, b2, *, tile_hid=512):
    """Pad to lane-dense multiples of 128 and cast matmul operands to bf16.

    Returns (w1p, gammap, betap, w2p, b2p).  b1 is intentionally dropped:
    a constant per-feature offset before training-mode BatchNorm cancels
    exactly, so the forward output is identical without it.
    """
    del b1
    in_dim, hid_dim = w1.shape
    out_dim = w2.shape[1]
    in_p = _round_up(in_dim, 128)
    th, hid_p = _hid_tiling(hid_dim, tile_hid)
    del th
    out_p = _round_up(out_dim, 128)

    w1p = _pad2(w1, in_p, hid_p).astype(jnp.bfloat16)
    w2p = _pad2(w2, hid_p, out_p).astype(jnp.bfloat16)
    gp = _pad2(gamma, 1, hid_p).astype(jnp.float32)
    bp = _pad2(beta, 1, hid_p).astype(jnp.float32)
    b2p = _pad2(b2, 1, out_p).astype(jnp.float32)
    return w1p, gp, bp, w2p, b2p


# --------------------------------------------------------------------------
# Forward
# --------------------------------------------------------------------------
@functools.partial(jax.jit, static_argnames=("out_dim", "tile_hid"))
def mlp_forward(x, w1p, gp, bp, w2p, b2p, *, out_dim, tile_hid=512):
    """x: (B, in_dim) f32, params from prepare_params (same tile_hid).

    tile_hid=512 suits v5e/v6e/v7x; v6e (128 MiB VMEM) can raise it to 1024,
    on v7x (64 MiB VMEM) keep it <= 512 so the budget stays under ~48 MiB.
    """
    B, in_dim = x.shape
    in_p, hid_p = w1p.shape
    out_p = w2p.shape[1]
    th = hid_p if hid_p <= tile_hid else max(128, (tile_hid // 128) * 128)
    assert hid_p % th == 0
    k_tiles = hid_p // th

    # Lane-pad the activations; padded in/hid/out features are provably inert
    # (zero weights, gamma/beta = 0 on padded columns).
    xp = _pad2(x, B, in_p).astype(jnp.bfloat16)

    # Advisory cost estimate (linear1 now really is computed once).
    flops = 2 * B * in_p * hid_p + 2 * B * hid_p * out_p + 8 * B * hid_p
    bytes_accessed = (B * in_p * 2 + in_p * hid_p * 2 + hid_p * out_p * 2
                      + 2 * hid_p * 4 + out_p * 4 + B * out_p * 4)

    # VMEM budget (double buffers where Pallas allocates them).
    vmem_est = (2 * B * in_p * 2            # resident x (2 bufs by default)
                + 2 * in_p * th * 2         # w1 tile double buffer
                + 2 * th * out_p * 2        # w2 tile double buffer
                + 2 * 2 * th * 4            # gamma / beta tiles
                + 2 * out_p * 4             # b2 (resident)
                + 2 * B * out_p * 4         # output block
                + 3 * B * th * 4)           # f32 h / centered temporaries
    vmem_limit = int(min(max(2 * vmem_est, 8 * 2**20), 96 * 2**20))

    grid_spec = pltpu.PrefetchScalarGridSpec(
        num_scalar_prefetch=0,
        grid=(k_tiles,),
        in_specs=[
            pl.BlockSpec((B, in_p), lambda k: (0, 0)),     # x: resident
            pl.BlockSpec((in_p, th), lambda k: (0, k)),    # w1 tile (streamed)
            pl.BlockSpec((1, th), lambda k: (0, k)),       # gamma tile
            pl.BlockSpec((1, th), lambda k: (0, k)),       # beta tile
            pl.BlockSpec((th, out_p), lambda k: (k, 0)),   # w2 tile (streamed)
            pl.BlockSpec((1, out_p), lambda k: (0, 0)),    # b2: resident
        ],
        out_specs=pl.BlockSpec((B, out_p), lambda k: (0, 0)),
    )

    out_p_arr = pl.pallas_call(
        _mlp_kernel,
        out_shape=jax.ShapeDtypeStruct((B, out_p), jnp.float32),
        grid_spec=grid_spec,
        compiler_params=pltpu.CompilerParams(
            dimension_semantics=("arbitrary",),
            vmem_limit_bytes=vmem_limit,
        ),
        cost_estimate=pl.CostEstimate(
            flops=flops,
            transcendentals=hid_p,           # one rsqrt per hidden feature
            bytes_accessed=bytes_accessed,
        ),
    )(xp, w1p, gp, bp, w2p, b2p)

    return out_p_arr[:, :out_dim]


# --------------------------------------------------------------------------
# Params / reference
# --------------------------------------------------------------------------
def init_params(key, in_dim, hid_dim, out_dim):
    """Deterministic PyTorch-style init (uniform(-1/sqrt(fan_in), +...))."""
    k1, k2, k3, k4 = jax.random.split(key, 4)
    lim1 = 1.0 / jnp.sqrt(in_dim)
    lim2 = 1.0 / jnp.sqrt(hid_dim)
    # stored already transposed relative to torch's (out, in)
    w1 = jax.random.uniform(k1, (in_dim, hid_dim), jnp.float32, -lim1, lim1)
    b1 = jax.random.uniform(k2, (1, hid_dim), jnp.float32, -lim1, lim1)
    w2 = jax.random.uniform(k3, (hid_dim, out_dim), jnp.float32, -lim2, lim2)
    b2 = jax.random.uniform(k4, (1, out_dim), jnp.float32, -lim2, lim2)
    gamma = jnp.ones((1, hid_dim), jnp.float32)   # BN weight
    beta = jnp.zeros((1, hid_dim), jnp.float32)   # BN bias
    return w1, b1, gamma, beta, w2, b2


def reference_forward(x, w1, b1, gamma, beta, w2, b2):
    """Reference with the kernel's numerics (bf16 matmul operands, f32 acc,
    f32 training-mode BatchNorm with biased two-pass variance, eps=1e-5).
    Includes b1 to validate that dropping it in the kernel is exact."""
    f32 = jnp.float32
    xb = x.astype(jnp.bfloat16).astype(f32)
    w1b = w1.astype(jnp.bfloat16).astype(f32)
    w2b = w2.astype(jnp.bfloat16).astype(f32)
    h = xb @ w1b + b1
    mean = jnp.mean(h, axis=0, keepdims=True)
    var = jnp.mean((h - mean) ** 2, axis=0, keepdims=True)
    h = (h - mean) * jax.lax.rsqrt(var + 1e-5) * gamma + beta
    h = jnp.maximum(h, 0.0).astype(jnp.bfloat16).astype(f32)
    return h @ w2b + b2


# TODO(synk): PyTorch training-mode BatchNorm1d also updates running_mean /
# running_var in place; that stateful side effect is not part of the forward
# output and is not reproduced here.

if __name__ == "__main__":
    key = jax.random.PRNGKey(0)
    kx, kp = jax.random.split(key)

    B, in_dim, hid_dim, out_dim = 8, 16, 32, 8
    x = jax.random.normal(kx, (B, in_dim), jnp.float32)
    w1, b1, gamma, beta, w2, b2 = init_params(kp, in_dim, hid_dim, out_dim)

    # Pad + cast once (outside the per-step forward).
    w1p, gp, bp, w2p, b2p = prepare_params(w1, b1, gamma, beta, w2, b2,
                                           tile_hid=512)

    out = mlp_forward(x, w1p, gp, bp, w2p, b2p, out_dim=out_dim, tile_hid=512)
    out = jax.block_until_ready(out)

    ref = reference_forward(x, w1, b1, gamma, beta, w2, b2)
    assert out.shape == (B, out_dim)
    assert jnp.allclose(out, ref, atol=1e-2, rtol=1e-2), "mismatch vs reference"

    print("KERNEL_OK")
</pallas_src>

<mosaic_0001>
module attributes {stable_mosaic.version = 11 : i64} {
  func.func @_mlp_kernel(%arg0: i32, %arg1: memref<8x128xbf16, #tpu.memory_space<vmem>>, %arg2: memref<128x128xbf16, #tpu.memory_space<vmem>>, %arg3: memref<1x128xf32, #tpu.memory_space<vmem>>, %arg4: memref<1x128xf32, #tpu.memory_space<vmem>>, %arg5: memref<128x128xbf16, #tpu.memory_space<vmem>>, %arg6: memref<1x128xf32, #tpu.memory_space<vmem>>, %arg7: memref<8x128xf32, #tpu.memory_space<vmem>>) attributes {dimension_semantics = [#tpu.dimension_semantics<arbitrary>], iteration_bounds = array<i64: 1>, scalar_prefetch = 0 : i64, scratch_operands = 0 : i64, tpu.core_type = #tpu.core_type<tc>, window_params = [{pipeline_mode = #tpu.pipeline_mode<synchronous>, transform_indices = @transform_0, window_bounds = array<i64: 8, 128>}, {transform_indices = @transform_1, window_bounds = array<i64: 128, 128>}, {transform_indices = @transform_2, window_bounds = array<i64: 1, 128>}, {transform_indices = @transform_3, window_bounds = array<i64: 1, 128>}, {transform_indices = @transform_4, window_bounds = array<i64: 128, 128>}, {pipeline_mode = #tpu.pipeline_mode<synchronous>, transform_indices = @transform_5, window_bounds = array<i64: 1, 128>}, {pipeline_mode = #tpu.pipeline_mode<synchronous>, transform_indices = @transform_6, window_bounds = array<i64: 8, 128>}]} {
    %c0 = arith.constant 0 : index
    %c0_0 = arith.constant 0 : index
    %0 = vector.load %arg1[%c0, %c0_0] : memref<8x128xbf16, #tpu.memory_space<vmem>>, vector<8x128xbf16>
    %c0_1 = arith.constant 0 : index
    %c0_2 = arith.constant 0 : index
    %1 = vector.load %arg2[%c0_1, %c0_2] : memref<128x128xbf16, #tpu.memory_space<vmem>>, vector<128x128xbf16>
    %cst = arith.constant dense<0.000000e+00> : vector<8x128xf32>
    %2 = tpu.matmul %0, %1, %cst {dimension_numbers = #tpu.dot_dimension_numbers<[1], [0], [0], [1], [0, 0, 1, 1], [], []>} : vector<8x128xbf16>, vector<128x128xbf16>, vector<8x128xf32> -> vector<8x128xf32>
    %cst_3 = arith.constant dense<0.000000e+00> : vector<128xf32>
    %3 = vector.multi_reduction <add>, %2, %cst_3 [0] : vector<8x128xf32> to vector<128xf32>
    %4 = vector.shape_cast %3 : vector<128xf32> to vector<1x128xf32>
    %cst_4 = arith.constant 1.250000e-01 : f32
    %5 = vector.broadcast %cst_4 : f32 to vector<1x128xf32>
    %6 = arith.mulf %4, %5 : vector<1x128xf32>
    %7 = vector.broadcast %6 : vector<1x128xf32> to vector<8x128xf32>
    %8 = arith.subf %2, %7 : vector<8x128xf32>
    %9 = arith.mulf %8, %8 : vector<8x128xf32>
    %cst_5 = arith.constant dense<0.000000e+00> : vector<128xf32>
    %10 = vector.multi_reduction <add>, %9, %cst_5 [0] : vector<8x128xf32> to vector<128xf32>
    %11 = vector.shape_cast %10 : vector<128xf32> to vector<1x128xf32>
    %cst_6 = arith.constant 1.250000e-01 : f32
    %12 = vector.broadcast %cst_6 : f32 to vector<1x128xf32>
    %13 = arith.mulf %11, %12 : vector<1x128xf32>
    %c0_7 = arith.constant 0 : index
    %c0_8 = arith.constant 0 : index
    %14 = vector.load %arg3[%c0_7, %c0_8] : memref<1x128xf32, #tpu.memory_space<vmem>>, vector<1x128xf32>
    %cst_9 = arith.constant 9.99999974E-6 : f32
    %15 = vector.broadcast %cst_9 : f32 to vector<1x128xf32>
    %16 = arith.addf %13, %15 : vector<1x128xf32>
    %17 = math.rsqrt %16 : vector<1x128xf32>
    %18 = arith.mulf %14, %17 : vector<1x128xf32>
    %19 = vector.broadcast %18 : vector<1x128xf32> to vector<8x128xf32>
    %20 = arith.mulf %8, %19 : vector<8x128xf32>
    %c0_10 = arith.constant 0 : index
    %c0_11 = arith.constant 0 : index
    %21 = vector.load %arg4[%c0_10, %c0_11] : memref<1x128xf32, #tpu.memory_space<vmem>>, vector<1x128xf32>
    %22 = vector.broadcast %21 : vector<1x128xf32> to vector<8x128xf32>
    %23 = arith.addf %20, %22 : vector<8x128xf32>
    %cst_12 = arith.constant 0.000000e+00 : f32
    %24 = vector.broadcast %cst_12 : f32 to vector<8x128xf32>
    %25 = arith.maximumf %23, %24 : vector<8x128xf32>
    %26 = arith.truncf %25 : vector<8x128xf32> to vector<8x128xbf16>
    %c0_i32 = arith.constant 0 : i32
    %27 = arith.cmpi eq, %arg0, %c0_i32 : i32
    %28 = arith.extui %27 : i1 to i32
    %c0_i32_13 = arith.constant 0 : i32
    %29 = arith.cmpi ne, %28, %c0_i32_13 : i32
    scf.if %29 {
      %c0_21 = arith.constant 0 : index
      %c0_22 = arith.constant 0 : index
      %35 = vector.load %arg6[%c0_21, %c0_22] : memref<1x128xf32, #tpu.memory_space<vmem>>, vector<1x128xf32>
      %36 = vector.shape_cast %35 : vector<1x128xf32> to vector<1x128xf32>
      %37 = vector.broadcast %36 : vector<1x128xf32> to vector<8x128xf32>
      %c0_23 = arith.constant 0 : index
      %c0_24 = arith.constant 0 : index
      %38 = vector.load %arg7[%c0_23, %c0_24] : memref<8x128xf32, #tpu.memory_space<vmem>>, vector<8x128xf32>
      tpu.vector_store %arg7[%c0_23, %c0_24], %37 {strides = array<i32>} : memref<8x128xf32, #tpu.memory_space<vmem>>, vector<8x128xf32>,
    } else {
    }
    %c0_14 = arith.constant 0 : index
    %c0_15 = arith.constant 0 : index
    %30 = vector.load %arg7[%c0_14, %c0_15] : memref<8x128xf32, #tpu.memory_space<vmem>>, vector<8x128xf32>
    %c0_16 = arith.constant 0 : index
    %c0_17 = arith.constant 0 : index
    %31 = vector.load %arg5[%c0_16, %c0_17] : memref<128x128xbf16, #tpu.memory_space<vmem>>, vector<128x128xbf16>
    %cst_18 = arith.constant dense<0.000000e+00> : vector<8x128xf32>
    %32 = tpu.matmul %26, %31, %cst_18 {dimension_numbers = #tpu.dot_dimension_numbers<[1], [0], [0], [1], [0, 0, 1, 1], [], []>} : vector<8x128xbf16>, vector<128x128xbf16>, vector<8x128xf32> -> vector<8x128xf32>
    %33 = arith.addf %30, %32 : vector<8x128xf32>
    %c0_19 = arith.constant 0 : index
    %c0_20 = arith.constant 0 : index
    %34 = vector.load %arg7[%c0_19, %c0_20] : memref<8x128xf32, #tpu.memory_space<vmem>>, vector<8x128xf32>
    tpu.vector_store %arg7[%c0_19, %c0_20], %33 {strides = array<i32>} : memref<8x128xf32, #tpu.memory_space<vmem>>, vector<8x128xf32>,
    return
  }
  func.func @transform_0(%arg0: i32) -> (i32, i32) {
    %c0_i32 = arith.constant 0 : i32
    %c0_i32_0 = arith.constant 0 : i32
    %c0_i32_1 = arith.constant 0 : i32
    return %c0_i32, %c0_i32_0 : i32, i32
  }
  func.func @transform_1(%arg0: i32) -> (i32, i32) {
    %c0_i32 = arith.constant 0 : i32
    %c0_i32_0 = arith.constant 0 : i32
    return %c0_i32, %arg0 : i32, i32
  }
  func.func @transform_2(%arg0: i32) -> (i32, i32) {
    %c0_i32 = arith.constant 0 : i32
    %c0_i32_0 = arith.constant 0 : i32
    return %c0_i32, %arg0 : i32, i32
  }
  func.func @transform_3(%arg0: i32) -> (i32, i32) {
    %c0_i32 = arith.constant 0 : i32
    %c0_i32_0 = arith.constant 0 : i32
    return %c0_i32, %arg0 : i32, i32
  }
  func.func @transform_4(%arg0: i32) -> (i32, i32) {
    %c0_i32 = arith.constant 0 : i32
    %c0_i32_0 = arith.constant 0 : i32
    return %arg0, %c0_i32 : i32, i32
  }
  func.func @transform_5(%arg0: i32) -> (i32, i32) {
    %c0_i32 = arith.constant 0 : i32
    %c0_i32_0 = arith.constant 0 : i32
    %c0_i32_1 = arith.constant 0 : i32
    return %c0_i32, %c0_i32_0 : i32, i32
  }
  func.func @transform_6(%arg0: i32) -> (i32, i32) {
    %c0_i32 = arith.constant 0 : i32
    %c0_i32_0 = arith.constant 0 : i32
    %c0_i32_1 = arith.constant 0 : i32
    return %c0_i32, %c0_i32_0 : i32, i32
  }
}

</mosaic_0001>

<bundles_post_ra>
// kernel: mlp_forward.1
= control target key start
LH: loop header
LB: loop body
LE: loop exit
PB: predicated region body
PF: predicated region fallthrough
CT: control target
= control target key end

     0   :  { %11 = vsyncpa [#allocation3], 0  ;;  %s593_s0 = inlined_call_operand.vmem [shape: bf16[8,128], index: 0, kind: input, shape index: {}]   ;;  %s594_s1 = inlined_call_operand.hbm [shape: bf16[128,128], index: 1, kind: input, shape index: {}]   ;;  %s595_s2 = inlined_call_operand.vmem [shape: f32[1,128], index: 2, kind: input, shape index: {}]   ;;  %s596_s3 = inlined_call_operand.vmem [shape: f32[1,128], index: 3, kind: input, shape index: {}]   ;;  %s597_s4 = inlined_call_operand.hbm [shape: bf16[128,128], index: 4, kind: input, shape index: {}]   ;;  %s598_s5 = inlined_call_operand.vmem [shape: f32[1,128], index: 5, kind: input, shape index: {}]   ;;  %s599_s6 = inlined_call_operand.hbm [shape: f32[8,128], index: 6, kind: output, shape index: {}]  }
   0x1   :  { %12 = vsyncpa [#allocation6], 0 }
   0x2   :  { %13 = vsyncpa [#allocation4], 0  ;;  %s503_s21 = smov [#allocation2]   ;;  %s431_s25 = scalar_lea.hbm %s594_s1, 1024 }
   0x3   :  { %s21_s22 = sshll.u32 %s503_s21, 4  ;;  %p432_p0 = scmp.ne.s32.totalorder %s594_s1, %s431_s25  ;;  %s22_s22 = int_to_ptr.vmem [resolvable:$true] %s21_s22 }
   0x4   :  { %p435_p1 = scmp.lt.u32.totalorder %s431_s25, %s594_s1 }
   0x6   :  { %p437_p2 = pnand %p435_p1, %p432_p0 }
   0x8   :  { %440 = shalt.err (!%p437_p2)
}
   0x9   :  { %s441_s30 = scalar_lea.vmem %s22_s22, 1024  ;;  %p446_p4 = scmp.lt.s32.totalorder %s22_s22, %s22_s22 }
   0xa   :  { %p442_p3 = scmp.ne.s32.totalorder %s22_s22, %s441_s30  ;;  %p447_p5 = scmp.lt.s32.totalorder %s441_s30, %s441_s30 }
   0xc   :  { %p448_p6 = por %p447_p5, %p446_p4 }
   0xe   :  { %p449_p7 = pnand %p448_p6, %p442_p3 }
  0x10   :  { %452 = shalt.err (!%p449_p7)
}
  0x11   :  { %s504_s7 = smov 64   ;;  %s505_s8 = smov 4  }
  0x12   :  { %27 = dma.hbm_to_vmem [thread:$0]  %s594_s1, 1024, %s22_s22, [#allocation3], %s504_s7, %s504_s7, %s505_s8  }
  0x13   :  { %s506_s11 = smov [#allocation5]   ;;  %s453_s15 = scalar_lea.hbm %s597_s4, 1024 }
  0x14   :  { %s37_s12 = sshll.u32 %s506_s11, 4  ;;  %p454_p8 = scmp.ne.s32.totalorder %s597_s4, %s453_s15  ;;  %s38_s12 = int_to_ptr.vmem [resolvable:$true] %s37_s12 }
  0x15   :  { %p457_p9 = scmp.lt.u32.totalorder %s453_s15, %s597_s4 }
  0x17   :  { %p459_p10 = pnand %p457_p9, %p454_p8 }
  0x19   :  { %462 = shalt.err (!%p459_p10)
}
  0x1a   :  { %s463_s20 = scalar_lea.vmem %s38_s12, 1024  ;;  %p468_p12 = scmp.lt.s32.totalorder %s38_s12, %s38_s12 }
  0x1b   :  { %p464_p11 = scmp.ne.s32.totalorder %s38_s12, %s463_s20  ;;  %p469_p13 = scmp.lt.s32.totalorder %s463_s20, %s463_s20 }
  0x1d   :  { %p470_p0 = por %p469_p13, %p468_p12 }
  0x1f   :  { %p471_p1 = pnand %p470_p0, %p464_p11 }
  0x21   :  { %474 = shalt.err (!%p471_p1)
}
  0x22   :  { %43 = dma.hbm_to_vmem [thread:$0]  %s597_s4, 1024, %s38_s12, [#allocation6], %s504_s7, %s504_s7, %s505_s8  }
  0x23   :  { %497 = dma.done.wait [#allocation3], 1024  }
  0x24   :  { %498 = vsyncadd [#allocation3], 4294966272 }
  0x25   :  { %499 = dma.done.wait [#allocation6], 1024  }
  0x26   :  { %500 = vsyncadd [#allocation6], 4294966272  ;;  %v507_v0 = vmov 0.0   ;;  %vm508_vm0 = vmmov 0   ;;  %v413_v1 = vld [vmem:[#allocation2] sm:$0xff]   ;;  %v414_v2 = vld [vmem:[#allocation2 + $0x8] sm:$0xff]   ;;  %v179_v39 = vlaneseq }
  0x27   :  { %366 = vmatprep.subr.bf16.mxu0 %v507_v0  ;;  %382 = vmatprep.mubr.msk.bf16.mxu0 %vm508_vm0, %v507_v0  ;;  %v415_v3 = vld [vmem:[#allocation2 + $0x10] sm:$0xff]   ;;  %v416_v4 = vld [vmem:[#allocation2 + $0x18] sm:$0xff]   ;;  %v417_v5 = vld [vmem:[#allocation2 + $0x20] sm:$0xff]   ;;  %s509_s28 = smov [#allocation7]  }
  0x28   :  { %386 = vmatprep.subr.bf16.mxu1 %v507_v0  ;;  %402 = vmatprep.mubr.msk.bf16.mxu1 %vm508_vm0, %v507_v0  ;;  %v418_v6 = vld [vmem:[#allocation2 + $0x28] sm:$0xff]   ;;  %v419_v7 = vld [vmem:[#allocation2 + $0x30] sm:$0xff]   ;;  %v420_v8 = vld [vmem:[#allocation2 + $0x38] sm:$0xff]   ;;  %v180_v40 = vshrl.u32 %v179_v39, 7  ;;  %s320_s29 = sshll.u32 %s509_s28, 4  ;;  %s321_s29 = int_to_ptr.vmem [resolvable:$true] %s320_s29 }
  0x29   :  { %367 = vmatpush3.bf16.msra.mxu0 %v413_v1  ;;  %v53_v9 = vld [vmem:[%s593_s0] sm:$0xf]  ;;  %v422_v11 = vld [vmem:[#allocation5 + $0x8] sm:$0xff]   ;;  %v423_v12 = vld [vmem:[#allocation5 + $0x10] sm:$0xff]   ;;  %p480_p3 = scmp.lt.s32.totalorder %s321_s29, %s321_s29 }
  0x2a   :  { %368 = vmatprep.subr.bf16.mxu0 %v507_v0  ;;  %v421_v10 = vld [vmem:[#allocation5] sm:$0xff]   ;;  %v424_v13 = vld [vmem:[#allocation5 + $0x18] sm:$0xff]   ;;  %v426_v15 = vld [vmem:[#allocation5 + $0x28] sm:$0xff]   ;;  %v181_v42 = vsub.s32 0, %v180_v40 }
  0x2b   :  { %387 = vmatpush3.bf16.msra.mxu1 %v421_v10  ;;  %v425_v14 = vld [vmem:[#allocation5 + $0x20] sm:$0xff]   ;;  %v427_v16 = vld [vmem:[#allocation5 + $0x30] sm:$0xff]   ;;  %v428_v17 = vld [vmem:[#allocation5 + $0x38] sm:$0xff]  }
  0x2c   :  { %388 = vmatprep.subr.bf16.mxu1 %v507_v0  ;;  %v174_v41 = vld [vmem:[%s595_s2] sm:$0x1]  ;;  %s475_s2 = scalar_lea.vmem %s321_s29, 128 }
  0x2d   :  { %369 = vmatpush3.bf16.msra.mxu0 %v414_v2  ;;  %v338_v46 = vld [vmem:[%s596_s3] ss:$0 sm:$0xff]  ;;  %p476_p2 = scmp.ne.s32.totalorder %s321_s29, %s475_s2  ;;  %p481_p4 = scmp.lt.s32.totalorder %s475_s2, %s475_s2 }
  0x2e   :  { %370 = vmatprep.subr.bf16.mxu0 %v507_v0  ;;  %v339_v51 = vld [vmem:[%s598_s5] ss:$0 sm:$0xff] }
  0x2f   :  { %389 = vmatpush3.bf16.msra.mxu1 %v422_v11  ;;  %p482_p5 = por %p481_p4, %p480_p3 }
  0x30   :  { %390 = vmatprep.subr.bf16.mxu1 %v507_v0 }
  0x31   :  { %371 = vmatpush3.bf16.msra.mxu0 %v415_v3  ;;  %p483_p6 = pnand %p482_p5, %p476_p2 }
  0x32   :  { %372 = vmatprep.subr.bf16.mxu0 %v507_v0 }
  0x33   :  { %391 = vmatpush3.bf16.msra.mxu1 %v423_v12 }
  0x34   :  { %392 = vmatprep.subr.bf16.mxu1 %v507_v0 }
  0x35   :  { %373 = vmatpush3.bf16.msra.mxu0 %v416_v4 }
  0x36   :  { %374 = vmatprep.subr.bf16.mxu0 %v507_v0 }
  0x37   :  { %393 = vmatpush3.bf16.msra.mxu1 %v424_v13 }
  0x38   :  { %394 = vmatprep.subr.bf16.mxu1 %v507_v0 }
  0x39   :  { %375 = vmatpush3.bf16.msra.mxu0 %v417_v5 }
  0x3a   :  { %376 = vmatprep.subr.bf16.mxu0 %v507_v0 }
  0x3b   :  { %395 = vmatpush3.bf16.msra.mxu1 %v425_v14 }
  0x3c   :  { %396 = vmatprep.subr.bf16.mxu1 %v507_v0 }
  0x3d   :  { %377 = vmatpush3.bf16.msra.mxu0 %v418_v6 }
  0x3e   :  { %378 = vmatprep.subr.bf16.mxu0 %v507_v0 }
  0x3f   :  { %397 = vmatpush3.bf16.msra.mxu1 %v426_v15 }
  0x40   :  { %398 = vmatprep.subr.bf16.mxu1 %v507_v0 }
  0x41   :  { %379 = vmatpush3.bf16.msra.mxu0 %v419_v7 }
  0x42   :  { %380 = vmatprep.subr.bf16.mxu0 %v507_v0 }
  0x43   :  { %399 = vmatpush3.bf16.msra.mxu1 %v427_v16 }
  0x44   :  { %400 = vmatprep.subr.bf16.mxu1 %v507_v0 }
  0x45   :  { %381 = vmatpush3.bf16.msra.mxu0 %v420_v8 }
  0x47   :  { %401 = vmatpush3.bf16.msra.mxu1 %v428_v17 }
  0x48   :  { %383 = vmatmul.mubr.bf16.vlgmr.msra.gmra.mrb[0].mxu0 %v53_v9 }
 0x11b   :  { %v152_v18 = vpop.f32.mrb[0].mxu0 }
 0x11c   :  { %v158_v19 = vrot.slane %v152_v18, 4  ;;  %v384_v20 = vpop.f32.mrb[1].mxu0 }
 0x11d   :  { %v155_v21 = vpop.f32.mrb[2].mxu0 }
 0x11e   :  { %v159_v22 = vadd.f32 %v158_v19, %v152_v18  ;;  %v385_v23 = vpop.f32.mrb[3].mxu0 }
 0x120   :  { %v160_v24 = vrot.slane %v159_v22, 2 }
 0x122   :  { %v161_v25 = vadd.f32 %v160_v24, %v159_v22 }
 0x124   :  { %v162_v26 = vrot.slane %v161_v25, 1 }
 0x126   :  { %v163_v27 = vadd.f32 %v162_v26, %v161_v25 }
 0x128   :  { %v164_v28 = vmul.f32 0.125, %v163_v27 }
 0x12a   :  { %v165_v29 = vsub.f32 %v152_v18, %v164_v28 }
 0x12c   :  { %v166_v30 = vmul.f32 %v165_v29, %v165_v29 }
 0x12e   :  { %v167_v31 = vrot.slane %v166_v30, 4 }
 0x130   :  { %v168_v32 = vadd.f32 %v167_v31, %v166_v30 }
 0x132   :  { %v169_v33 = vrot.slane %v168_v32, 2 }
 0x134   :  { %v170_v34 = vadd.f32 %v169_v33, %v168_v32 }
 0x136   :  { %v171_v35 = vrot.slane %v170_v34, 1 }
 0x138   :  { %v172_v36 = vadd.f32 %v171_v35, %v170_v34 }
 0x13a   :  { %v173_v37 = vmul.f32 0.125, %v172_v36 }
 0x13c   :  { %v175_v38 = vadd.f32 1e-05, %v173_v37 }
 0x13e   :  { %429 = vrsqrt.f32 %v175_v38 }
 0x148   :  { %v430_v43 = vpop.eup %429 }
 0x149   :  { %v177_v44 = vmul.f32 %v430_v43, %v174_v41 }
 0x14b   :  { %v182_v45 = vrot.slane %v177_v44, %v181_v42 }
 0x14d   :  { %v184_v47 = vmul.f32 %v182_v45, %v165_v29 }
 0x14f   :  { %v192_v48 = vadd.f32 %v338_v46, %v184_v47 }
 0x151   :  { %v193_v49 = vmax.f32 %v192_v48, 0.0 }
 0x153   :  { %v194_v50 = vpack.c.bf16 %v193_v49, %v193_v49 }
 0x155   :  { %403 = vmatmul.mubr.bf16.vlgmr.msra.gmra.mrb[0].mxu1 %v194_v50 }
 0x228   :  { %v306_v52 = vpop.f32.mrb[0].mxu1 }
 0x229   :  { %v312_v53 = vadd.f32 %v339_v51, %v306_v52  ;;  %v404_v54 = vpop.f32.mrb[1].mxu1 }
 0x22a   :  { %v309_v55 = vpop.f32.mrb[2].mxu1 }
 0x22b   :  { %313 = vst [vmem:[#allocation7] sm:$0xff] %v312_v53  ;;  %v405_v56 = vpop.f32.mrb[3].mxu1 }
 0x22c   :  { %486 = shalt.err (!%p483_p6)
}
 0x22d   :  { %s487_s5 = scalar_lea.hbm %s599_s6, 128 }
 0x22e   :  { %p488_p7 = scmp.ne.s32.totalorder %s599_s6, %s487_s5  ;;  %p491_p8 = scmp.lt.u32.totalorder %s487_s5, %s599_s6 }
 0x230   :  { %p493_p9 = pnand %p491_p8, %p488_p7 }
 0x232   :  { %496 = shalt.err (!%p493_p9)
}
 0x233   :  { %323 = dma.vmem_to_hbm [thread:$0]  %s321_s29, 128, %s599_s6, [#allocation4]  }
 0x234   :  { %501 = dma.done.wait [#allocation4], 128  }
 0x235   :  { %502 = vsyncadd [#allocation4], 4294967168 }
 0x236   :  { %327 = vsyncpa [#allocation3], 1 }
 0x237   :  { %328 = vsyncpa [#allocation6], 1 }
 0x238   :  { %329 = vsyncpa [#allocation4], 1 }

</bundles_post_ra>
